<compile_context>
chip_gen: v7x
topology: tpu7x:2x2x1
jax: 0.10.0
libtpu: 0.0.40
codegen_flags: <defaults>
</compile_context>

<pallas_src>
import functools

import jax
import jax.numpy as jnp
from jax.experimental import pallas as pl
from jax.experimental.pallas import tpu as pltpu


def _round_up(x, m):
    return (x + m - 1) // m * m


_COMPILER_PARAMS_PARALLEL = pltpu.CompilerParams(
    dimension_semantics=("parallel",), vmem_limit_bytes=32 * 1024 * 1024)
_COMPILER_PARAMS_REDUCE = pltpu.CompilerParams(
    dimension_semantics=("arbitrary",), vmem_limit_bytes=32 * 1024 * 1024)


# ----------------------------------------------------------------------------
# Pallas kernels
# ----------------------------------------------------------------------------

def _conv_mm_relu_kernel(p_ref, w_ref, b_ref, o_ref):
    # p: (TILE_M, K_pad) bf16 im2col patches, w: (K_pad, COUT_PAD) bf16,
    # b: (1, COUT_PAD) f32.  relu(p @ w + b) with f32 accumulation (epilogue
    # kept in f32: v5e VPU has no bf16 datapath).
    acc = jnp.dot(p_ref[...], w_ref[...], preferred_element_type=jnp.float32)
    acc = acc + b_ref[...]
    o_ref[...] = jnp.maximum(acc, 0.0)


def _paired_l1_kernel(xy_ref, o_ref, *, n):
    # xy: (2N, C, TILE_HW) f32; accumulate sum |xy[:N] - xy[N:]| over HW tiles.
    step = pl.program_id(0)

    @pl.when(step == 0)
    def _():
        o_ref[0, 0] = 0.0

    xy = xy_ref[...].astype(jnp.float32)
    o_ref[0, 0] += jnp.sum(jnp.abs(xy[:n] - xy[n:]))


def _paired_l1_gram_kernel(xy_ref, o_ref, gi_acc, go_acc, *, n):
    # Fused per-layer loss: reads the combined feature map once per HW tile.
    #   o_ref[0,0] <- sum |f_in - f_out|               (feature L1 numerator)
    #   o_ref[0,1] <- sum |f_in@f_in^T - f_out@f_out^T| (unnormalized gram L1)
    step = pl.program_id(0)

    @pl.when(step == 0)
    def _():
        o_ref[0, 0] = 0.0
        o_ref[0, 1] = 0.0
        gi_acc[...] = jnp.zeros_like(gi_acc)
        go_acc[...] = jnp.zeros_like(go_acc)

    xy = xy_ref[...].astype(jnp.float32)
    x = xy[:n]                       # (N, C, TILE_HW) input features
    y = xy[n:]                       # (N, C, TILE_HW) target features

    # Elementwise L1 in f32.
    o_ref[0, 0] += jnp.sum(jnp.abs(x - y))

    # Partial grams on the MXU in bf16 with f32 accumulation.
    xb = x.astype(jnp.bfloat16)
    yb = y.astype(jnp.bfloat16)
    gi_acc[...] += jnp.einsum('ncx,ndx->ncd', xb, xb,
                              preferred_element_type=jnp.float32)
    go_acc[...] += jnp.einsum('ncx,ndx->ncd', yb, yb,
                              preferred_element_type=jnp.float32)

    @pl.when(step == pl.num_programs(0) - 1)
    def _():
        o_ref[0, 1] = jnp.sum(jnp.abs(gi_acc[...] - go_acc[...]))


# ----------------------------------------------------------------------------
# Wrappers
# ----------------------------------------------------------------------------

def conv3x3_relu_pallas(x_nchw, w_oihw, b):
    """3x3 conv, stride 1, pad 1, + ReLU.  Gridded, pipelined MXU matmul."""
    N, C, H, W = x_nchw.shape
    Cout = w_oihw.shape[0]
    K = C * 9
    M = N * H * W

    # im2col (XLA glue).
    # TODO(synk): patches could be built in-kernel from a halo block to cut HBM
    # traffic ~9x; kept wrapper-side here for simplicity/robustness.
    xp = jnp.pad(x_nchw, ((0, 0), (0, 0), (1, 1), (1, 1)))
    cols = []
    for dy in range(3):
        for dx in range(3):
            cols.append(xp[:, :, dy:dy + H, dx:dx + W])
    patches = jnp.stack(cols, axis=2)                        # (N, C, 9, H, W)
    patches = patches.transpose(0, 3, 4, 1, 2).reshape(M, K)

    # MXU-friendly padding: lane-dense output (Cout -> 128k), K -> multiple of 8,
    # M -> multiple of the row tile.
    cout_pad = _round_up(Cout, 128)
    k_pad = _round_up(K, 8)
    tile_m = min(512, _round_up(M, 8))
    m_pad = _round_up(M, tile_m)

    patches = jnp.pad(patches, ((0, m_pad - M), (0, k_pad - K))).astype(jnp.bfloat16)
    w2d = jnp.pad(w_oihw.reshape(Cout, K).T,
                  ((0, k_pad - K), (0, cout_pad - Cout))).astype(jnp.bfloat16)
    b2d = jnp.pad(b.reshape(1, Cout).astype(jnp.float32),
                  ((0, 0), (0, cout_pad - Cout)))

    out = pl.pallas_call(
        _conv_mm_relu_kernel,
        out_shape=jax.ShapeDtypeStruct((m_pad, cout_pad), jnp.float32),
        grid=(m_pad // tile_m,),
        in_specs=[
            pl.BlockSpec((tile_m, k_pad), lambda i: (i, 0)),      # row tile
            pl.BlockSpec((k_pad, cout_pad), lambda i: (0, 0)),    # weights (resident)
            pl.BlockSpec((1, cout_pad), lambda i: (0, 0)),        # bias (resident)
        ],
        out_specs=pl.BlockSpec((tile_m, cout_pad), lambda i: (i, 0)),
        compiler_params=_COMPILER_PARAMS_PARALLEL,
    )(patches, w2d, b2d)

    out = out[:M, :Cout].reshape(N, H, W, Cout).transpose(0, 3, 1, 2)  # NCHW
    return out


def _hw_tiling(hw):
    tile_hw = min(2048, _round_up(hw, 128))
    hw_pad = _round_up(hw, tile_hw)
    return tile_hw, hw_pad


def paired_l1_mean_pallas(xy_nchw):
    """mean(|xy[:N] - xy[N:]|) over all elements (== F.l1_loss(input, target))."""
    two_n, C, H, W = xy_nchw.shape
    n = two_n // 2
    hw = H * W
    tile_hw, hw_pad = _hw_tiling(hw)
    xy = jnp.pad(xy_nchw.reshape(two_n, C, hw),
                 ((0, 0), (0, 0), (0, hw_pad - hw)))

    s = pl.pallas_call(
        functools.partial(_paired_l1_kernel, n=n),
        out_shape=jax.ShapeDtypeStruct((1, 1), jnp.float32),
        grid=(hw_pad // tile_hw,),
        in_specs=[pl.BlockSpec((two_n, C, tile_hw), lambda i: (0, 0, i))],
        out_specs=pl.BlockSpec((1, 1), lambda i: (0, 0),
                               memory_space=pltpu.MemorySpace.SMEM),
        compiler_params=_COMPILER_PARAMS_REDUCE,
    )(xy)
    return s[0, 0] / (n * C * H * W)


def paired_feat_gram_losses_pallas(xy_nchw):
    """Fused per-layer losses for a combined (input;target) feature map.

    Returns (feature_l1_mean, gram_l1_mean) where
      feature_l1_mean = mean |f_in - f_out|
      gram_l1_mean    = mean |gram(f_in) - gram(f_out)|, gram = X X^T / (C*H*W)
    """
    two_n, C, H, W = xy_nchw.shape
    n = two_n // 2
    hw = H * W
    tile_hw, hw_pad = _hw_tiling(hw)
    xy = jnp.pad(xy_nchw.reshape(two_n, C, hw),
                 ((0, 0), (0, 0), (0, hw_pad - hw)))

    sums = pl.pallas_call(
        functools.partial(_paired_l1_gram_kernel, n=n),
        out_shape=jax.ShapeDtypeStruct((1, 2), jnp.float32),
        grid=(hw_pad // tile_hw,),
        in_specs=[pl.BlockSpec((two_n, C, tile_hw), lambda i: (0, 0, i))],
        out_specs=pl.BlockSpec((1, 2), lambda i: (0, 0),
                               memory_space=pltpu.MemorySpace.SMEM),
        scratch_shapes=[pltpu.VMEM((n, C, C), jnp.float32),
                        pltpu.VMEM((n, C, C), jnp.float32)],
        compiler_params=_COMPILER_PARAMS_REDUCE,
    )(xy)
    feat_l1 = sums[0, 0] / (n * C * H * W)
    gram_l1 = sums[0, 1] / (C * H * W) / (n * C * C)
    return feat_l1, gram_l1


# ----------------------------------------------------------------------------
# FeatureLoss
# ----------------------------------------------------------------------------

class FeatureLossPallas:
    """Mirrors FeatureLoss.forward:
         loss = L1(input, target)
              + sum_i w_i * L1(feat_i(input), feat_i(target))
              + sum_i w_i^2 * 5000 * L1(gram(feat_i(input)), gram(feat_i(target)))
    """

    def __init__(self, conv_params, layer_wgts):
        self.conv_params = conv_params          # list of (w_oihw, b)
        self.wgts = layer_wgts
        n = len(layer_wgts)
        self.metric_names = (['pixel'] + [f'feat_{i}' for i in range(n)]
                             + [f'gram_{i}' for i in range(n)])

    def make_features(self, x):
        feats = []
        h = x
        for (w, b) in self.conv_params:
            h = conv3x3_relu_pallas(h, w, b)
            feats.append(h)                      # "hooked" output of every block
        return feats

    def __call__(self, input, target):
        # Run input and target through the extractor together (one conv pass,
        # first batch-half = input features, second half = target features).
        both = jnp.concatenate([input, target], axis=0)       # (2N, C, H, W)
        feats_both = self.make_features(both)

        feat_losses = [paired_l1_mean_pallas(both)]           # pixel L1
        layer_l1, layer_gram = [], []
        for fb in feats_both:                                 # fused L1 + gram
            l1, gram = paired_feat_gram_losses_pallas(fb)
            layer_l1.append(l1)
            layer_gram.append(gram)
        feat_losses += [l1 * w for l1, w in zip(layer_l1, self.wgts)]
        feat_losses += [g * (w ** 2) * 5000.0
                        for g, w in zip(layer_gram, self.wgts)]
        self.metrics = dict(zip(self.metric_names, feat_losses))
        return sum(feat_losses)


def make_feature_extractor_params(key, channels=(3, 8, 16, 16)):
    """Deterministic synthetic conv3x3 weights for the 'VGG-like' extractor."""
    params = []
    for i in range(len(channels) - 1):
        key, kw, kb = jax.random.split(key, 3)
        cin, cout = channels[i], channels[i + 1]
        w = jax.random.normal(kw, (cout, cin, 3, 3), jnp.float32) * (1.0 / (cin * 9) ** 0.5)
        b = jax.random.normal(kb, (cout,), jnp.float32) * 0.01
        params.append((w, b))
    return params


if __name__ == "__main__":
    key = jax.random.PRNGKey(0)
    k_in, k_tgt, k_par = jax.random.split(key, 3)

    # Small shapes consistent with the module: NCHW images, 3 channels.
    input_img = jax.random.normal(k_in, (2, 3, 16, 16), jnp.float32)
    target_img = jax.random.normal(k_tgt, (2, 3, 16, 16), jnp.float32)

    conv_params = make_feature_extractor_params(k_par)
    layer_wgts = [20.0, 70.0, 10.0]

    feat_loss = FeatureLossPallas(conv_params, layer_wgts)
    loss = feat_loss(input_img, target_img)
    loss = jax.block_until_ready(loss)

    assert jnp.isfinite(loss), "loss is not finite"
    print("KERNEL_OK")
</pallas_src>

<mosaic_0001>
module attributes {stable_mosaic.version = 11 : i64} {
  func.func @_conv_mm_relu_kernel(%arg0: i32, %arg1: memref<512x32xbf16, #tpu.memory_space<vmem>>, %arg2: memref<32x128xbf16, #tpu.memory_space<vmem>>, %arg3: memref<1x128xf32, #tpu.memory_space<vmem>>, %arg4: memref<512x128xf32, #tpu.memory_space<vmem>>) attributes {dimension_semantics = [#tpu.dimension_semantics<parallel>], iteration_bounds = array<i64: 2>, scalar_prefetch = 0 : i64, scratch_operands = 0 : i64, tpu.core_type = #tpu.core_type<tc>, window_params = [{transform_indices = @transform_0, window_bounds = array<i64: 512, 32>}, {pipeline_mode = #tpu.pipeline_mode<synchronous>, transform_indices = @transform_1, window_bounds = array<i64: 32, 128>}, {pipeline_mode = #tpu.pipeline_mode<synchronous>, transform_indices = @transform_2, window_bounds = array<i64: 1, 128>}, {transform_indices = @transform_3, window_bounds = array<i64: 512, 128>}]} {
    %c0 = arith.constant 0 : index
    %c0_0 = arith.constant 0 : index
    %0 = vector.load %arg1[%c0, %c0_0] : memref<512x32xbf16, #tpu.memory_space<vmem>>, vector<512x32xbf16>
    %c0_1 = arith.constant 0 : index
    %c0_2 = arith.constant 0 : index
    %1 = vector.load %arg2[%c0_1, %c0_2] : memref<32x128xbf16, #tpu.memory_space<vmem>>, vector<32x128xbf16>
    %cst = arith.constant dense<0.000000e+00> : vector<512x128xf32>
    %2 = tpu.matmul %0, %1, %cst {dimension_numbers = #tpu.dot_dimension_numbers<[1], [0], [0], [1], [0, 0, 1, 1], [], []>} : vector<512x32xbf16>, vector<32x128xbf16>, vector<512x128xf32> -> vector<512x128xf32>
    %c0_3 = arith.constant 0 : index
    %c0_4 = arith.constant 0 : index
    %3 = vector.load %arg3[%c0_3, %c0_4] : memref<1x128xf32, #tpu.memory_space<vmem>>, vector<1x128xf32>
    %4 = vector.broadcast %3 : vector<1x128xf32> to vector<512x128xf32>
    %5 = arith.addf %2, %4 : vector<512x128xf32>
    %cst_5 = arith.constant 0.000000e+00 : f32
    %6 = vector.broadcast %cst_5 : f32 to vector<512x128xf32>
    %7 = arith.maximumf %5, %6 : vector<512x128xf32>
    %c0_6 = arith.constant 0 : index
    %c0_7 = arith.constant 0 : index
    %8 = vector.load %arg4[%c0_6, %c0_7] : memref<512x128xf32, #tpu.memory_space<vmem>>, vector<512x128xf32>
    tpu.vector_store %arg4[%c0_6, %c0_7], %7 {strides = array<i32>} : memref<512x128xf32, #tpu.memory_space<vmem>>, vector<512x128xf32>,
    return
  }
  func.func @transform_0(%arg0: i32) -> (i32, i32) {
    %c0_i32 = arith.constant 0 : i32
    %c0_i32_0 = arith.constant 0 : i32
    return %arg0, %c0_i32 : i32, i32
  }
  func.func @transform_1(%arg0: i32) -> (i32, i32) {
    %c0_i32 = arith.constant 0 : i32
    %c0_i32_0 = arith.constant 0 : i32
    %c0_i32_1 = arith.constant 0 : i32
    return %c0_i32, %c0_i32_0 : i32, i32
  }
  func.func @transform_2(%arg0: i32) -> (i32, i32) {
    %c0_i32 = arith.constant 0 : i32
    %c0_i32_0 = arith.constant 0 : i32
    %c0_i32_1 = arith.constant 0 : i32
    return %c0_i32, %c0_i32_0 : i32, i32
  }
  func.func @transform_3(%arg0: i32) -> (i32, i32) {
    %c0_i32 = arith.constant 0 : i32
    %c0_i32_0 = arith.constant 0 : i32
    return %arg0, %c0_i32 : i32, i32
  }
}

</mosaic_0001>

<bundles_post_ra>
// kernel: tpu_custom_call.1
= control target key start
LH: loop header
LB: loop body
LE: loop exit
PB: predicated region body
PF: predicated region fallthrough
CT: control target
= control target key end

     0   :  { %8 = vsyncpa [#allocation3], 0  ;;  %s1672_s0 = inlined_call_operand.vmem [shape: bf16[1024,32], index: 0, kind: input, shape index: {}]   ;;  %s1673_s1 = inlined_call_operand.vmem [shape: bf16[32,128], index: 1, kind: input, shape index: {}]   ;;  %s1674_s2 = inlined_call_operand.vmem [shape: f32[1,128], index: 2, kind: input, shape index: {}]   ;;  %s1675_s3 = inlined_call_operand.hbm [shape: f32[1024,128], index: 3, kind: output, shape index: {}]  }
   0x1   :  { %10 = vsyncpa [#allocation3 + $0x1], 0  ;;  %s1358_s12 = smov 0   ;;  %s1360_s13 = smov 0  }
   0x2   :  { %s1362_s14 = smov 0   ;;  %s1364_s15 = smov 0  }
   0x3 LB: > { %s1379_s16 = sadd.s32 4294967295, %s1333_s15   ;;  %s1010_s17 = sadd.s32 4294967294, %s1333_s15   ;;  %s1333_s15 = sphi %s1364_s15, %s1681_s15   ;;  %s1329_s14 = sphi %s1362_s14, %s1680_s14   ;;  %s1325_s13 = sphi %s1360_s13, %s1679_s13   ;;  %s1321_s12 = sphi %s1358_s12, %s1678_s12  }
   0x4   : > { %s1383_s18 = sadd.s32 1, %s1333_s15   ;;  %s91_s19 = sadd.s32 1, %s1329_s14 }
   0x5   : > { %s88_s20 = ssub.s32 %s1333_s15, %s1383_s18  ;;  %p101_p0 = scmp.ne.s32.totalorder %s1329_s14, %s1325_s13 }
   0x6   : > { %p89_p1 = scmp.eq.s32.totalorder %s88_s20, 0  ;;  %p102_p2 = scmp.eq.s32.totalorder %s1379_s16, 1 }
   0x7   : > { %p107_p3 = scmp.ne.s32.totalorder %s1325_s13, %s1321_s12  ;;  %p108_p4 = scmp.eq.s32.totalorder %s1010_s17, 1 }
   0x8   : > { %s1394_s21 = scalar_select %p89_p1, %s1329_s14, %s91_s19  }
   0x9   : > { %p1396_p5 = por %p102_p2, %p101_p0  ;;  %p1400_p6 = por %p108_p4, %p107_p3 }
   0xa   : > { %p1013_p7 = scmp.ge.s32.totalorder %s1333_s15, 1  ;;  %p141_p8 = scmp.lt.s32.totalorder %s1333_s15, 3 }
   0xc   : > { %p142_p9 = pnand %p1013_p7, %p141_p8 }
   0xd   : > { %v1237_v0 = vld [vmem:[%s1673_s1] sm:$0xff] (!%p142_p9)   ;;  %s1015_s26 = sshll.u32 (!%p142_p9), %s1379_s16, 6  ;;  %v1238_v1 = vld [vmem:[%s1673_s1 + $0x8] sm:$0xff] (!%p142_p9)   ;;  %vm420_vm0 = vcmask (!%p142_p9), 261120   ;;  %s162_s6 = sand.u32 (!%p142_p9), 1, %s1325_s13  }
   0xe   : > { %145 = sbr.rel (%p142_p9) target bundleno = 317 (0x13d), region = 32  ;;  %p166_p10 = scmp.lt.s32.totalorder (!%p142_p9), %s1015_s26, 127  ;;  %1124 = vmatprep.subr.bf16.mxu0 (!%p142_p9), %v1237_v0  ;;  %1192 = vmatprep.subr.bf16.mxu1 (!%p142_p9), %v1237_v0  ;;  %v1486_v34 = vld [vmem:[%s1674_s2] ss:$0 sm:$0xff] (!%p142_p9) }
   0xf   : > { %1125 = vmatpush3.bf16.msra.mxu0 (!%p142_p9), %v1237_v0  ;;  %1194 = vmatpush3.bf16.msra.mxu1 (!%p142_p9), %v1237_v0  ;;  %s1014_s9 = sshll.u32 (!%p142_p9), %s162_s6, 9  ;;  %s1089_s11 = sshll.u32 (!%p142_p9), %s1379_s16, 13 }
  0x10   : > { %1126 = vmatprep.subr.bf16.mxu0 (!%p142_p9), %v1238_v1  ;;  %1193 = vmatprep.subr.bf16.mxu1 (!%p142_p9), %v1238_v1  ;;  %s1497_s10 = scalar_lea.vmem (!%p142_p9), [#allocation2], %s1014_s9  ;;  %s1620_s20 = scalar_lea.hbm (!%p142_p9), %s1675_s3, %s1089_s11 }
  0x11   : > { %s948_s17 = sshll.u32 (!%p142_p9), %s1497_s10, 4  ;;  %s1631_s24 = scalar_lea.sflag (!%p142_p9), [#allocation3], %s162_s6  ;;  %s1622_s17 = int_to_ptr.vmem [resolvable:$true] %s948_s17 }
  0x12   : > { %s1271_s25 = scalar_lea.vmem (!%p142_p9), %s1622_s17, 8192 }
  0x13   : > { %1127 = vmatpush3.bf16.msra.mxu0 (!%p142_p9), %v1238_v1  ;;  %1195 = vmatpush3.bf16.msra.mxu1 (!%p142_p9), %v1238_v1  ;;  %p1272_p11 = scmp.ne.s32.totalorder (!%p142_p9), %s1622_s17, %s1271_s25 }
  0x15   : > { %s1683_s26 = smov (!%p166_p10, %s1015_s26), 127  ;;  %p1273_p12 = pnand %p1272_p11, %p1396_p5 }
  0x16   : > { %s1016_s29 = sshll.u32 %s1683_s26, 2  ;;  %s1335_s26 = smov [#allocation2]  }
  0x17   : > { %s1416_s5 = scalar_lea.vmem %s1672_s0, %s1016_s29  ;;  %p1274_p13 = pneg %p1273_p12 }
  0x18   : > { %v1239_v2 = vld [vmem:[%s1416_s5] sm:$0xff]   ;;  %v1241_v4 = vld [vmem:[%s1416_s5 + $0x8] sm:$0xff]   ;;  %v1243_v6 = vld [vmem:[%s1416_s5 + $0x10] sm:$0xff]   ;;  %s1275_s27 = sshll.u32 %s1335_s26, 4  ;;  %s1276_s27 = int_to_ptr.vmem [resolvable:$false] %s1275_s27 }
  0x19   : > { %v1240_v3 = vld [vmem:[%s1416_s5 + $0x80] sm:$0xff]   ;;  %1128 = vmatprep.mubr.msk.bf16.mxu0 %vm420_vm0, %v1239_v2  ;;  %v1242_v5 = vld [vmem:[%s1416_s5 + $0x88] sm:$0xff]   ;;  %v1244_v7 = vld [vmem:[%s1416_s5 + $0x90] sm:$0xff]   ;;  %s1277_s28 = scalar_lea.vmem %s1276_s27, 16384  ;;  %p1278_p0 = scmp.lt.s32.totalorder %s1622_s17, %s1276_s27 }
  0x1a   : > { %1160 = vmatprep.mubr.msk.bf16.mxu1 %vm420_vm0, %v1240_v3  ;;  %1129 = vmatmul.mubr.msk.bf16.vlgmr.msra.gmra.mrb[0].mxu0 %vm420_vm0, %v1241_v4  ;;  %v1245_v8 = vld [vmem:[%s1416_s5 + $0x18] sm:$0xff]   ;;  %v1247_v10 = vld [vmem:[%s1416_s5 + $0x20] sm:$0xff]   ;;  %v1249_v12 = vld [vmem:[%s1416_s5 + $0x28] sm:$0xff]   ;;  %p1279_p1 = scmp.lt.s32.totalorder %s1277_s28, %s1271_s25 }
  0x1b   : > { %1161 = vmatmul.mubr.msk.bf16.vlgmr.msra.gmra.mrb[0].mxu1 %vm420_vm0, %v1242_v5  ;;  %1132 = vmatprep.mubr.msk.bf16.mxu0 %vm420_vm0, %v1243_v6  ;;  %v1246_v9 = vld [vmem:[%s1416_s5 + $0x98] sm:$0xff]   ;;  %v1248_v11 = vld [vmem:[%s1416_s5 + $0xa0] sm:$0xff]   ;;  %v1250_v13 = vld [vmem:[%s1416_s5 + $0xa8] sm:$0xff]  }
  0x1c   : > { %1164 = vmatprep.mubr.msk.bf16.mxu1 %vm420_vm0, %v1244_v7  ;;  %v1251_v14 = vld [vmem:[%s1416_s5 + $0x30] sm:$0xff]   ;;  %v1253_v16 = vld [vmem:[%s1416_s5 + $0x38] sm:$0xff]   ;;  %v1255_v18 = vld [vmem:[%s1416_s5 + $0x40] sm:$0xff]   ;;  %p1280_p2 = por %p1279_p1, %p1278_p0 }
  0x1d   : > { %v1252_v15 = vld [vmem:[%s1416_s5 + $0xb0] sm:$0xff]   ;;  %v1254_v17 = vld [vmem:[%s1416_s5 + $0xb8] sm:$0xff]   ;;  %v1256_v19 = vld [vmem:[%s1416_s5 + $0xc0] sm:$0xff]  }
  0x1e   : > { %v1257_v20 = vld [vmem:[%s1416_s5 + $0x48] sm:$0xff]   ;;  %v1259_v22 = vld [vmem:[%s1416_s5 + $0x50] sm:$0xff]   ;;  %v1261_v24 = vld [vmem:[%s1416_s5 + $0x58] sm:$0xff]   ;;  %p1281_p3 = pnand %p1280_p2, %p1274_p13 }
  0x1f   : > { %v1258_v21 = vld [vmem:[%s1416_s5 + $0xc8] sm:$0xff]   ;;  %v1260_v23 = vld [vmem:[%s1416_s5 + $0xd0] sm:$0xff]   ;;  %v1262_v25 = vld [vmem:[%s1416_s5 + $0xd8] sm:$0xff]  }
  0x20   : > { %v1263_v26 = vld [vmem:[%s1416_s5 + $0x60] sm:$0xff]   ;;  %v1265_v28 = vld [vmem:[%s1416_s5 + $0x68] sm:$0xff]   ;;  %v1267_v30 = vld [vmem:[%s1416_s5 + $0x70] sm:$0xff]  }
  0x21   : > { %v1264_v27 = vld [vmem:[%s1416_s5 + $0xe0] sm:$0xff]   ;;  %v1266_v29 = vld [vmem:[%s1416_s5 + $0xe8] sm:$0xff]   ;;  %v1268_v31 = vld [vmem:[%s1416_s5 + $0xf0] sm:$0xff]  }
  0x22   : > { %1133 = vmatmul.mubr.msk.bf16.gmra.mrb[4].mxu0 %vm420_vm0, %v1245_v8  ;;  %v1269_v32 = vld [vmem:[%s1416_s5 + $0x78] sm:$0xff]  }
  0x23   : > { %1165 = vmatmul.mubr.msk.bf16.gmra.mrb[4].mxu1 %vm420_vm0, %v1246_v9  ;;  %1136 = vmatprep.mubr.msk.bf16.mxu0 %vm420_vm0, %v1247_v10  ;;  %v1270_v33 = vld [vmem:[%s1416_s5 + $0xf8] sm:$0xff]  }
  0x24   : > { %1168 = vmatprep.mubr.msk.bf16.mxu1 %vm420_vm0, %v1248_v11 }
  0x2a   : > { %1137 = vmatmul.mubr.msk.bf16.gmra.mrb[8].mxu0 %vm420_vm0, %v1249_v12 }
  0x2b   : > { %1169 = vmatmul.mubr.msk.bf16.gmra.mrb[8].mxu1 %vm420_vm0, %v1250_v13  ;;  %1140 = vmatprep.mubr.msk.bf16.mxu0 %vm420_vm0, %v1251_v14 }
  0x2c   : > { %1172 = vmatprep.mubr.msk.bf16.mxu1 %vm420_vm0, %v1252_v15 }
  0x32   : > { %1141 = vmatmul.mubr.msk.bf16.gmra.mrb[12].mxu0 %vm420_vm0, %v1253_v16 }
  0x33   : > { %1173 = vmatmul.mubr.msk.bf16.gmra.mrb[12].mxu1 %vm420_vm0, %v1254_v17  ;;  %1144 = vmatprep.mubr.msk.bf16.mxu0 %vm420_vm0, %v1255_v18 }
  0x34   : > { %1176 = vmatprep.mubr.msk.bf16.mxu1 %vm420_vm0, %v1256_v19 }
  0x3a   : > { %1145 = vmatmul.mubr.msk.bf16.gmra.mrb[16].mxu0 %vm420_vm0, %v1257_v20 }
  0x3b   : > { %1177 = vmatmul.mubr.msk.bf16.gmra.mrb[16].mxu1 %vm420_vm0, %v1258_v21  ;;  %1148 = vmatprep.mubr.msk.bf16.mxu0 %vm420_vm0, %v1259_v22 }
  0x3c   : > { %1180 = vmatprep.mubr.msk.bf16.mxu1 %vm420_vm0, %v1260_v23 }
  0x42   : > { %1149 = vmatmul.mubr.msk.bf16.gmra.mrb[20].mxu0 %vm420_vm0, %v1261_v24 }
  0x43   : > { %1181 = vmatmul.mubr.msk.bf16.gmra.mrb[20].mxu1 %vm420_vm0, %v1262_v25  ;;  %1152 = vmatprep.mubr.msk.bf16.mxu0 %vm420_vm0, %v1263_v26 }
  0x44   : > { %1184 = vmatprep.mubr.msk.bf16.mxu1 %vm420_vm0, %v1264_v27 }
  0x4a   : > { %1153 = vmatmul.mubr.msk.bf16.gmra.mrb[24].mxu0 %vm420_vm0, %v1265_v28 }
  0x4b   : > { %1185 = vmatmul.mubr.msk.bf16.gmra.mrb[24].mxu1 %vm420_vm0, %v1266_v29  ;;  %1156 = vmatprep.mubr.msk.bf16.mxu0 %vm420_vm0, %v1267_v30 }
  0x4c   : > { %1188 = vmatprep.mubr.msk.bf16.mxu1 %vm420_vm0, %v1268_v31 }
  0x52   : > { %1157 = vmatmul.mubr.msk.bf16.gmra.mrb[28].mxu0 %vm420_vm0, %v1269_v32 }
  0x53   : > { %1189 = vmatmul.mubr.msk.bf16.gmra.mrb[28].mxu1 %vm420_vm0, %v1270_v33 }
  0xed   : > { %v1130_v35 = vpop.f32.mrb[0].mxu0 }
  0xee   : > { %v560_v36 = vadd.f32 %v1130_v35, %v1486_v34  ;;  %v1162_v37 = vpop.f32.mrb[0].mxu1  ;;  %v551_v38 = vpop.f32.mrb[1].mxu0 }
  0xef   : > { %v688_v39 = vadd.f32 %v1162_v37, %v1486_v34  ;;  %v552_v40 = vadd.f32 %v1486_v34, %v551_v38  ;;  %v679_v41 = vpop.f32.mrb[1].mxu1  ;;  %v1131_v42 = vpop.f32.mrb[2].mxu0 }
  0xf0   : > { %v808_v43 = vmax.f32 %v560_v36, 0.0  ;;  %v680_v44 = vadd.f32 %v1486_v34, %v679_v41  ;;  %v563_v45 = vadd.f32 %v1131_v42, %v1486_v34  ;;  %v1163_v46 = vpop.f32.mrb[2].mxu1  ;;  %v554_v47 = vpop.f32.mrb[3].mxu0 }
  0xf1   : > { %v840_v48 = vmax.f32 %v688_v39, 0.0  ;;  %v806_v49 = vmax.f32 %v552_v40, 0.0  ;;  %v691_v50 = vadd.f32 %v1163_v46, %v1486_v34  ;;  %v555_v51 = vadd.f32 %v1486_v34, %v554_v47  ;;  %v682_v52 = vpop.f32.mrb[3].mxu1 }
  0xf2   : > { %872 = vst [vmem:[%s1497_s10 + $0x10] sm:$0xff] %v808_v43  ;;  %v838_v53 = vmax.f32 %v680_v44, 0.0  ;;  %v809_v54 = vmax.f32 %v563_v45, 0.0  ;;  %v683_v55 = vadd.f32 %v1486_v34, %v682_v52 }
  0xf3   : > { %904 = vst [vmem:[%s1497_s10 + $0x110] sm:$0xff] %v840_v48  ;;  %870 = vst [vmem:[%s1497_s10] sm:$0xff] %v806_v49  ;;  %v841_v56 = vmax.f32 %v691_v50, 0.0  ;;  %v807_v57 = vmax.f32 %v555_v51, 0.0 }
  0xf4   : > { %902 = vst [vmem:[%s1497_s10 + $0x100] sm:$0xff] %v838_v53  ;;  %873 = vst [vmem:[%s1497_s10 + $0x18] sm:$0xff] %v809_v54  ;;  %v839_v58 = vmax.f32 %v683_v55, 0.0 }
  0xf5   : > { %905 = vst [vmem:[%s1497_s10 + $0x118] sm:$0xff] %v841_v56  ;;  %871 = vst [vmem:[%s1497_s10 + $0x8] sm:$0xff] %v807_v57  ;;  %v1134_v59 = vpop.f32.mrb[4].mxu0 }
  0xf6   : > { %903 = vst [vmem:[%s1497_s10 + $0x108] sm:$0xff] %v839_v58  ;;  %v576_v60 = vadd.f32 %v1134_v59, %v1486_v34  ;;  %v1166_v61 = vpop.f32.mrb[4].mxu1  ;;  %v567_v62 = vpop.f32.mrb[5].mxu0 }
  0xf7   : > { %v704_v63 = vadd.f32 %v1166_v61, %v1486_v34  ;;  %v568_v0 = vadd.f32 %v1486_v34, %v567_v62  ;;  %v695_v1 = vpop.f32.mrb[5].mxu1  ;;  %v1135_v2 = vpop.f32.mrb[6].mxu0 }
  0xf8   : > { %v812_v3 = vmax.f32 %v576_v60, 0.0  ;;  %v696_v4 = vadd.f32 %v1486_v34, %v695_v1  ;;  %v579_v5 = vadd.f32 %v1135_v2, %v1486_v34  ;;  %v1167_v6 = vpop.f32.mrb[6].mxu1  ;;  %v570_v7 = vpop.f32.mrb[7].mxu0 }
  0xf9   : > { %v844_v8 = vmax.f32 %v704_v63, 0.0  ;;  %v810_v9 = vmax.f32 %v568_v0, 0.0  ;;  %v707_v10 = vadd.f32 %v1167_v6, %v1486_v34  ;;  %v571_v11 = vadd.f32 %v1486_v34, %v570_v7  ;;  %v698_v12 = vpop.f32.mrb[7].mxu1 }
  0xfa   : > { %876 = vst [vmem:[%s1497_s10 + $0x30] sm:$0xff] %v812_v3  ;;  %v842_v13 = vmax.f32 %v696_v4, 0.0  ;;  %v813_v14 = vmax.f32 %v579_v5, 0.0  ;;  %v699_v15 = vadd.f32 %v1486_v34, %v698_v12 }
  0xfb   : > { %908 = vst [vmem:[%s1497_s10 + $0x130] sm:$0xff] %v844_v8  ;;  %874 = vst [vmem:[%s1497_s10 + $0x20] sm:$0xff] %v810_v9  ;;  %v845_v16 = vmax.f32 %v707_v10, 0.0  ;;  %v811_v17 = vmax.f32 %v571_v11, 0.0 }
  0xfc   : > { %906 = vst [vmem:[%s1497_s10 + $0x120] sm:$0xff] %v842_v13  ;;  %877 = vst [vmem:[%s1497_s10 + $0x38] sm:$0xff] %v813_v14  ;;  %v843_v18 = vmax.f32 %v699_v15, 0.0 }
  0xfd   : > { %909 = vst [vmem:[%s1497_s10 + $0x138] sm:$0xff] %v845_v16  ;;  %875 = vst [vmem:[%s1497_s10 + $0x28] sm:$0xff] %v811_v17  ;;  %v1138_v19 = vpop.f32.mrb[8].mxu0 }
  0xfe   : > { %907 = vst [vmem:[%s1497_s10 + $0x128] sm:$0xff] %v843_v18  ;;  %v592_v20 = vadd.f32 %v1138_v19, %v1486_v34  ;;  %v1170_v21 = vpop.f32.mrb[8].mxu1  ;;  %v583_v22 = vpop.f32.mrb[9].mxu0 }
  0xff   : > { %v720_v23 = vadd.f32 %v1170_v21, %v1486_v34  ;;  %v584_v24 = vadd.f32 %v1486_v34, %v583_v22  ;;  %v711_v25 = vpop.f32.mrb[9].mxu1  ;;  %v1139_v26 = vpop.f32.mrb[10].mxu0 }
 0x100   : > { %v816_v27 = vmax.f32 %v592_v20, 0.0  ;;  %v712_v28 = vadd.f32 %v1486_v34, %v711_v25  ;;  %v595_v29 = vadd.f32 %v1139_v26, %v1486_v34  ;;  %v1171_v30 = vpop.f32.mrb[10].mxu1  ;;  %v586_v31 = vpop.f32.mrb[11].mxu0 }
 0x101   : > { %v848_v32 = vmax.f32 %v720_v23, 0.0  ;;  %v814_v33 = vmax.f32 %v584_v24, 0.0  ;;  %v723_v35 = vadd.f32 %v1171_v30, %v1486_v34  ;;  %v587_v36 = vadd.f32 %v1486_v34, %v586_v31  ;;  %v714_v37 = vpop.f32.mrb[11].mxu1 }
 0x102   : > { %880 = vst [vmem:[%s1497_s10 + $0x50] sm:$0xff] %v816_v27  ;;  %v846_v38 = vmax.f32 %v712_v28, 0.0  ;;  %v817_v39 = vmax.f32 %v595_v29, 0.0  ;;  %v715_v40 = vadd.f32 %v1486_v34, %v714_v37 }
 0x103   : > { %912 = vst [vmem:[%s1497_s10 + $0x150] sm:$0xff] %v848_v32  ;;  %878 = vst [vmem:[%s1497_s10 + $0x40] sm:$0xff] %v814_v33  ;;  %v849_v41 = vmax.f32 %v723_v35, 0.0  ;;  %v815_v42 = vmax.f32 %v587_v36, 0.0 }
 0x104   : > { %910 = vst [vmem:[%s1497_s10 + $0x140] sm:$0xff] %v846_v38  ;;  %881 = vst [vmem:[%s1497_s10 + $0x58] sm:$0xff] %v817_v39  ;;  %v847_v43 = vmax.f32 %v715_v40, 0.0 }
 0x105   : > { %913 = vst [vmem:[%s1497_s10 + $0x158] sm:$0xff] %v849_v41  ;;  %879 = vst [vmem:[%s1497_s10 + $0x48] sm:$0xff] %v815_v42  ;;  %v1142_v44 = vpop.f32.mrb[12].mxu0 }
 0x106   : > { %911 = vst [vmem:[%s1497_s10 + $0x148] sm:$0xff] %v847_v43  ;;  %v608_v45 = vadd.f32 %v1142_v44, %v1486_v34  ;;  %v1174_v46 = vpop.f32.mrb[12].mxu1  ;;  %v599_v47 = vpop.f32.mrb[13].mxu0 }
 0x107   : > { %v736_v48 = vadd.f32 %v1174_v46, %v1486_v34  ;;  %v600_v49 = vadd.f32 %v1486_v34, %v599_v47  ;;  %v727_v50 = vpop.f32.mrb[13].mxu1  ;;  %v1143_v51 = vpop.f32.mrb[14].mxu0 }
 0x108   : > { %v820_v52 = vmax.f32 %v608_v45, 0.0  ;;  %v728_v53 = vadd.f32 %v1486_v34, %v727_v50  ;;  %v611_v54 = vadd.f32 %v1143_v51, %v1486_v34  ;;  %v1175_v55 = vpop.f32.mrb[14].mxu1  ;;  %v602_v56 = vpop.f32.mrb[15].mxu0 }
 0x109   : > { %v852_v57 = vmax.f32 %v736_v48, 0.0  ;;  %v818_v58 = vmax.f32 %v600_v49, 0.0  ;;  %v739_v59 = vadd.f32 %v1175_v55, %v1486_v34  ;;  %v603_v60 = vadd.f32 %v1486_v34, %v602_v56  ;;  %v730_v61 = vpop.f32.mrb[15].mxu1 }
 0x10a   : > { %884 = vst [vmem:[%s1497_s10 + $0x70] sm:$0xff] %v820_v52  ;;  %v850_v62 = vmax.f32 %v728_v53, 0.0  ;;  %v821_v63 = vmax.f32 %v611_v54, 0.0  ;;  %v731_v0 = vadd.f32 %v1486_v34, %v730_v61 }
 0x10b   : > { %916 = vst [vmem:[%s1497_s10 + $0x170] sm:$0xff] %v852_v57  ;;  %882 = vst [vmem:[%s1497_s10 + $0x60] sm:$0xff] %v818_v58  ;;  %v853_v1 = vmax.f32 %v739_v59, 0.0  ;;  %v819_v2 = vmax.f32 %v603_v60, 0.0 }
 0x10c   : > { %914 = vst [vmem:[%s1497_s10 + $0x160] sm:$0xff] %v850_v62  ;;  %885 = vst [vmem:[%s1497_s10 + $0x78] sm:$0xff] %v821_v63  ;;  %v851_v3 = vmax.f32 %v731_v0, 0.0 }
 0x10d   : > { %917 = vst [vmem:[%s1497_s10 + $0x178] sm:$0xff] %v853_v1  ;;  %883 = vst [vmem:[%s1497_s10 + $0x68] sm:$0xff] %v819_v2  ;;  %v1146_v4 = vpop.f32.mrb[16].mxu0 }
 0x10e   : > { %915 = vst [vmem:[%s1497_s10 + $0x168] sm:$0xff] %v851_v3  ;;  %v624_v5 = vadd.f32 %v1146_v4, %v1486_v34  ;;  %v1178_v6 = vpop.f32.mrb[16].mxu1  ;;  %v615_v7 = vpop.f32.mrb[17].mxu0 }
 0x10f   : > { %v752_v8 = vadd.f32 %v1178_v6, %v1486_v34  ;;  %v616_v9 = vadd.f32 %v1486_v34, %v615_v7  ;;  %v743_v10 = vpop.f32.mrb[17].mxu1  ;;  %v1147_v11 = vpop.f32.mrb[18].mxu0 }
 0x110   : > { %v824_v12 = vmax.f32 %v624_v5, 0.0  ;;  %v744_v13 = vadd.f32 %v1486_v34, %v743_v10  ;;  %v627_v14 = vadd.f32 %v1147_v11, %v1486_v34  ;;  %v1179_v15 = vpop.f32.mrb[18].mxu1  ;;  %v618_v16 = vpop.f32.mrb[19].mxu0 }
 0x111   : > { %v856_v17 = vmax.f32 %v752_v8, 0.0  ;;  %v822_v18 = vmax.f32 %v616_v9, 0.0  ;;  %v755_v19 = vadd.f32 %v1179_v15, %v1486_v34  ;;  %v619_v20 = vadd.f32 %v1486_v34, %v618_v16  ;;  %v746_v21 = vpop.f32.mrb[19].mxu1 }
 0x112   : > { %888 = vst [vmem:[%s1497_s10 + $0x90] sm:$0xff] %v824_v12  ;;  %v854_v22 = vmax.f32 %v744_v13, 0.0  ;;  %v825_v23 = vmax.f32 %v627_v14, 0.0  ;;  %v747_v24 = vadd.f32 %v1486_v34, %v746_v21 }
 0x113   : > { %920 = vst [vmem:[%s1497_s10 + $0x190] sm:$0xff] %v856_v17  ;;  %886 = vst [vmem:[%s1497_s10 + $0x80] sm:$0xff] %v822_v18  ;;  %v857_v25 = vmax.f32 %v755_v19, 0.0  ;;  %v823_v26 = vmax.f32 %v619_v20, 0.0 }
 0x114   : > { %918 = vst [vmem:[%s1497_s10 + $0x180] sm:$0xff] %v854_v22  ;;  %889 = vst [vmem:[%s1497_s10 + $0x98] sm:$0xff] %v825_v23  ;;  %v855_v27 = vmax.f32 %v747_v24, 0.0 }
 0x115   : > { %921 = vst [vmem:[%s1497_s10 + $0x198] sm:$0xff] %v857_v25  ;;  %887 = vst [vmem:[%s1497_s10 + $0x88] sm:$0xff] %v823_v26  ;;  %v1150_v28 = vpop.f32.mrb[20].mxu0 }
 0x116   : > { %919 = vst [vmem:[%s1497_s10 + $0x188] sm:$0xff] %v855_v27  ;;  %v640_v29 = vadd.f32 %v1150_v28, %v1486_v34  ;;  %v1182_v30 = vpop.f32.mrb[20].mxu1  ;;  %v631_v31 = vpop.f32.mrb[21].mxu0 }
 0x117   : > { %v768_v32 = vadd.f32 %v1182_v30, %v1486_v34  ;;  %v632_v33 = vadd.f32 %v1486_v34, %v631_v31  ;;  %v759_v35 = vpop.f32.mrb[21].mxu1  ;;  %v1151_v36 = vpop.f32.mrb[22].mxu0 }
 0x118   : > { %v828_v37 = vmax.f32 %v640_v29, 0.0  ;;  %v760_v38 = vadd.f32 %v1486_v34, %v759_v35  ;;  %v643_v39 = vadd.f32 %v1151_v36, %v1486_v34  ;;  %v1183_v40 = vpop.f32.mrb[22].mxu1  ;;  %v634_v41 = vpop.f32.mrb[23].mxu0 }
 0x119   : > { %v860_v42 = vmax.f32 %v768_v32, 0.0  ;;  %v826_v43 = vmax.f32 %v632_v33, 0.0  ;;  %v771_v44 = vadd.f32 %v1183_v40, %v1486_v34  ;;  %v635_v45 = vadd.f32 %v1486_v34, %v634_v41  ;;  %v762_v46 = vpop.f32.mrb[23].mxu1 }
 0x11a   : > { %892 = vst [vmem:[%s1497_s10 + $0xb0] sm:$0xff] %v828_v37  ;;  %v858_v47 = vmax.f32 %v760_v38, 0.0  ;;  %v829_v48 = vmax.f32 %v643_v39, 0.0  ;;  %v763_v49 = vadd.f32 %v1486_v34, %v762_v46 }
 0x11b   : > { %924 = vst [vmem:[%s1497_s10 + $0x1b0] sm:$0xff] %v860_v42  ;;  %890 = vst [vmem:[%s1497_s10 + $0xa0] sm:$0xff] %v826_v43  ;;  %v861_v50 = vmax.f32 %v771_v44, 0.0  ;;  %v827_v51 = vmax.f32 %v635_v45, 0.0 }
 0x11c   : > { %922 = vst [vmem:[%s1497_s10 + $0x1a0] sm:$0xff] %v858_v47  ;;  %893 = vst [vmem:[%s1497_s10 + $0xb8] sm:$0xff] %v829_v48  ;;  %v859_v52 = vmax.f32 %v763_v49, 0.0 }
 0x11d   : > { %925 = vst [vmem:[%s1497_s10 + $0x1b8] sm:$0xff] %v861_v50  ;;  %891 = vst [vmem:[%s1497_s10 + $0xa8] sm:$0xff] %v827_v51  ;;  %v1154_v53 = vpop.f32.mrb[24].mxu0 }
 0x11e   : > { %923 = vst [vmem:[%s1497_s10 + $0x1a8] sm:$0xff] %v859_v52  ;;  %v656_v54 = vadd.f32 %v1154_v53, %v1486_v34  ;;  %v1186_v55 = vpop.f32.mrb[24].mxu1  ;;  %v647_v56 = vpop.f32.mrb[25].mxu0 }
 0x11f   : > { %v784_v57 = vadd.f32 %v1186_v55, %v1486_v34  ;;  %v648_v58 = vadd.f32 %v1486_v34, %v647_v56  ;;  %v775_v59 = vpop.f32.mrb[25].mxu1  ;;  %v1155_v60 = vpop.f32.mrb[26].mxu0 }
 0x120   : > { %v832_v61 = vmax.f32 %v656_v54, 0.0  ;;  %v776_v62 = vadd.f32 %v1486_v34, %v775_v59  ;;  %v659_v63 = vadd.f32 %v1155_v60, %v1486_v34  ;;  %v1187_v0 = vpop.f32.mrb[26].mxu1  ;;  %v650_v1 = vpop.f32.mrb[27].mxu0 }
 0x121   : > { %v864_v2 = vmax.f32 %v784_v57, 0.0  ;;  %v830_v3 = vmax.f32 %v648_v58, 0.0  ;;  %v787_v4 = vadd.f32 %v1187_v0, %v1486_v34  ;;  %v651_v5 = vadd.f32 %v1486_v34, %v650_v1  ;;  %v778_v6 = vpop.f32.mrb[27].mxu1 }
 0x122   : > { %896 = vst [vmem:[%s1497_s10 + $0xd0] sm:$0xff] %v832_v61  ;;  %v862_v7 = vmax.f32 %v776_v62, 0.0  ;;  %v833_v8 = vmax.f32 %v659_v63, 0.0  ;;  %v779_v9 = vadd.f32 %v1486_v34, %v778_v6 }
 0x123   : > { %928 = vst [vmem:[%s1497_s10 + $0x1d0] sm:$0xff] %v864_v2  ;;  %894 = vst [vmem:[%s1497_s10 + $0xc0] sm:$0xff] %v830_v3  ;;  %v865_v10 = vmax.f32 %v787_v4, 0.0  ;;  %v831_v11 = vmax.f32 %v651_v5, 0.0 }
 0x124   : > { %926 = vst [vmem:[%s1497_s10 + $0x1c0] sm:$0xff] %v862_v7  ;;  %897 = vst [vmem:[%s1497_s10 + $0xd8] sm:$0xff] %v833_v8  ;;  %v863_v12 = vmax.f32 %v779_v9, 0.0 }
 0x125   : > { %929 = vst [vmem:[%s1497_s10 + $0x1d8] sm:$0xff] %v865_v10  ;;  %895 = vst [vmem:[%s1497_s10 + $0xc8] sm:$0xff] %v831_v11  ;;  %v1158_v13 = vpop.f32.mrb[28].mxu0 }
 0x126   : > { %927 = vst [vmem:[%s1497_s10 + $0x1c8] sm:$0xff] %v863_v12  ;;  %v672_v14 = vadd.f32 %v1158_v13, %v1486_v34  ;;  %v1190_v15 = vpop.f32.mrb[28].mxu1  ;;  %v663_v16 = vpop.f32.mrb[29].mxu0 }
 0x127   : > { %v800_v17 = vadd.f32 %v1190_v15, %v1486_v34  ;;  %v664_v18 = vadd.f32 %v1486_v34, %v663_v16  ;;  %v791_v19 = vpop.f32.mrb[29].mxu1  ;;  %v1159_v20 = vpop.f32.mrb[30].mxu0 }
 0x128   : > { %v836_v21 = vmax.f32 %v672_v14, 0.0  ;;  %v792_v22 = vadd.f32 %v1486_v34, %v791_v19  ;;  %v675_v23 = vadd.f32 %v1159_v20, %v1486_v34  ;;  %v1191_v24 = vpop.f32.mrb[30].mxu1  ;;  %v666_v25 = vpop.f32.mrb[31].mxu0 }
 0x129   : > { %v868_v26 = vmax.f32 %v800_v17, 0.0  ;;  %v834_v27 = vmax.f32 %v664_v18, 0.0  ;;  %v803_v28 = vadd.f32 %v1191_v24, %v1486_v34  ;;  %v667_v29 = vadd.f32 %v1486_v34, %v666_v25  ;;  %v794_v30 = vpop.f32.mrb[31].mxu1 }
 0x12a   : > { %900 = vst [vmem:[%s1497_s10 + $0xf0] sm:$0xff] %v836_v21  ;;  %v866_v31 = vmax.f32 %v792_v22, 0.0  ;;  %v837_v32 = vmax.f32 %v675_v23, 0.0  ;;  %v795_v33 = vadd.f32 %v1486_v34, %v794_v30 }
 0x12b   : > { %932 = vst [vmem:[%s1497_s10 + $0x1f0] sm:$0xff] %v868_v26  ;;  %898 = vst [vmem:[%s1497_s10 + $0xe0] sm:$0xff] %v834_v27  ;;  %v869_v35 = vmax.f32 %v803_v28, 0.0  ;;  %v835_v36 = vmax.f32 %v667_v29, 0.0 }
 0x12c   : > { %930 = vst [vmem:[%s1497_s10 + $0x1e0] sm:$0xff] %v866_v31  ;;  %901 = vst [vmem:[%s1497_s10 + $0xf8] sm:$0xff] %v837_v32  ;;  %v867_v37 = vmax.f32 %v795_v33, 0.0 }
 0x12d   : > { %933 = vst [vmem:[%s1497_s10 + $0x1f8] sm:$0xff] %v869_v35  ;;  %899 = vst [vmem:[%s1497_s10 + $0xe8] sm:$0xff] %v835_v36 }
 0x12e   : > { %931 = vst [vmem:[%s1497_s10 + $0x1e8] sm:$0xff] %v867_v37 }
 0x12f   : > { %1284 = shalt.err (!%p1281_p3)
}
 0x130   : > { %s1285_s29 = scalar_lea.hbm %s1620_s20, 8192  ;;  %s1289_s5 = scalar_lea.hbm %s1675_s3, 16384 }
 0x131   : > { %p1286_p4 = scmp.ne.s32.totalorder %s1620_s20, %s1285_s29  ;;  %p1290_p9 = scmp.lt.u32.totalorder %s1620_s20, %s1675_s3 }
 0x132   : > { %p1291_p10 = scmp.lt.u32.totalorder %s1289_s5, %s1285_s29  ;;  %p1293_p12 = scmp.lt.u32.totalorder %s1285_s29, %s1620_s20 }
 0x133   : > { %p1287_p7 = pnand %p1286_p4, %p1396_p5 }
 0x134   : > { %p1292_p11 = por %p1291_p10, %p1290_p9 }
 0x135   : > { %p1288_p8 = pneg %p1287_p7 }
 0x136   : > { %p1294_p13 = por %p1293_p12, %p1292_p11 }
 0x138   : > { %p1295_p0 = pnand %p1294_p13, %p1288_p8 }
 0x13a   : > { %1298 = shalt.err (!%p1295_p0)
}
 0x13b   : > { %s1336_s8 = smov 128   ;;  %s1337_s9 = smov 8  }
 0x13c   : > { %1196 = dma.vmem_to_hbm [thread:$0]  (%p1396_p5), %s1622_s17, 8192, %s1620_s20, %s1631_s24, %s1336_s8, %s1336_s8, %s1337_s9  }
 0x13d PF: > { %p1202_p1 = scmp.ge.s32.totalorder %s1333_s15, 2  ;;  %s963_s10 = sand.u32 1, %s1321_s12  }
 0x13e   : > { %s964_s11 = scalar_lea.sflag [#allocation3], %s963_s10 }
 0x13f   : > { %p1199_p2 = pnand %p1202_p1, %p1400_p6 }
 0x141   : > { %1316 = dma.done.wait (!%p1199_p2), %s964_s11, 8192  }
 0x142   : > { %1318 = vsyncadd (!%p1199_p2), %s964_s11, 4294959104  ;;  %p13_p3 = scmp.ge.s32.totalorder %s1383_s18, 4   ;;  %s1678_s12 = smov %s1325_s13 }
 0x143   : > { %s1679_s13 = smov %s1329_s14  ;;  %s1680_s14 = smov %s1394_s21 }
 0x144   : > { %s1681_s15 = smov %s1383_s18  ;;  %15 = sbr.rel (!%p13_p3) target bundleno = 3 (0x3), region = 67 }
 0x14b   :  { %969 = vsyncpa [#allocation3], 1 }
 0x14c   :  { %971 = vsyncpa [#allocation3 + $0x1], 1 }

</bundles_post_ra>
